<compile_context>
chip_gen: v6e
topology: v6e:2x2x1
jax: 0.10.0
libtpu: 0.0.40
codegen_flags: <defaults>
</compile_context>

<pallas_src>
import functools

import jax
import jax.numpy as jnp
from jax import lax
from jax.experimental import pallas as pl
from jax.experimental.pallas import tpu as pltpu


def _cdiv(a, b):
    return -(-a // b)


def _round_up(a, b):
    return _cdiv(a, b) * b


def _rmsnorm_kernel(x_ref, w_ref, o_ref, *, eps):
    # x_ref: (row_tile, H), w_ref: (1, H), o_ref: (row_tile, H)
    x = x_ref[...].astype(jnp.float32)
    mean_sq = jnp.mean(x * x, axis=-1, keepdims=True)   # XLU row reduce
    inv = lax.rsqrt(mean_sq + eps)                       # EUP
    w = w_ref[...].astype(jnp.float32)                   # (1, H), broadcasts
    o_ref[...] = (w * (x * inv)).astype(o_ref.dtype)


def _vmem_capacity_bytes():
    try:
        return int(pltpu.get_tpu_info().vmem_capacity_bytes)
    except Exception:
        return 64 << 20  # conservative default (v7x-sized per-core VMEM)


def _pick_row_tile(rows, H, itemsize, pack, vmem_budget):
    # Resident VMEM bytes per tile row: double-buffered input + double-buffered
    # output (same dtype) + one live f32 temp inside the kernel (4 B/elem).
    per_row = H * (2 * itemsize + 2 * itemsize + 4)
    tile_budget = max(pack, vmem_budget // per_row)
    # Bytes-based block target instead of a fixed row cap: >=4 MiB input blocks
    # sit near the HBM roofline, 16 MiB bounds per-block latency/VMEM.
    max_blk_rows = max(pack, (16 << 20) // (H * itemsize))
    tile = min(tile_budget, max_blk_rows)
    tile = max(pack, (tile // pack) * pack)
    tile = min(tile, _round_up(rows, pack))       # never larger than one full pass
    tile = max(pack, (tile // pack) * pack)
    # Prefer an even step count when multi-step so a 2-TC chip (v7x) splits the
    # "parallel" axis evenly; costs at most one slightly smaller block.
    steps = _cdiv(rows, tile)
    if steps > 1 and steps % 2 == 1:
        alt = max(pack, _round_up(_cdiv(rows, steps + 1), pack))
        if _cdiv(rows, alt) % 2 == 0:
            tile = alt
    return tile


def rmsnorm(x, weight, eps=1e-5, row_tile=None):
    """RMSNorm over the last axis of x. x: (..., H), weight: (H,)."""
    orig_shape = x.shape
    H = orig_shape[-1]
    rows = 1
    for d in orig_shape[:-1]:
        rows *= d

    itemsize = jnp.dtype(x.dtype).itemsize
    pack = 8 * max(1, 4 // itemsize)   # sublane packing: f32->8, bf16->16, i8->32

    vmem_cap = _vmem_capacity_bytes()
    # Clamp to 64 MiB so the auto-tile is per-TensorCore-safe on v7x even if
    # the API reports the 128 MiB chip total; v5e/v6e never need more here.
    safe_cap = min(vmem_cap, 64 << 20)

    if row_tile is None:
        row_tile = _pick_row_tile(rows, H, itemsize, pack,
                                  min(40 << 20, int(0.6 * safe_cap)))
    else:
        row_tile = max(pack, _round_up(int(row_tile), pack))

    # Pure metadata reshapes — no padding, no extra HBM passes.
    x2d = x.reshape(rows, H)
    w2d = weight.reshape(1, H)

    grid = (pl.cdiv(rows, row_tile),)

    # Explicit scoped-VMEM limit: double-buffered in/out blocks + f32 temp +
    # double-buffered weight row, with 1.5x headroom, capped at the safe cap.
    needed = (row_tile * H * (4 * itemsize + 4)
              + 2 * H * jnp.dtype(w2d.dtype).itemsize)
    vmem_limit = int(min(max(32 << 20, needed + (needed >> 1)), safe_cap))

    kernel = functools.partial(_rmsnorm_kernel, eps=eps)

    out = pl.pallas_call(
        kernel,
        out_shape=jax.ShapeDtypeStruct((rows, H), x.dtype),
        grid_spec=pltpu.PrefetchScalarGridSpec(
            num_scalar_prefetch=0,
            grid=grid,
            in_specs=[
                # Partial boundary row-block is fine: per-row reduction + masked
                # OOB writes mean garbage rows can't affect real outputs.
                pl.BlockSpec((row_tile, H), lambda i: (i, 0)),   # x tile
                # Constant index_map -> Pallas skips re-DMA after step 0.
                pl.BlockSpec((1, H), lambda i: (0, 0)),          # weight
            ],
            out_specs=pl.BlockSpec((row_tile, H), lambda i: (i, 0)),
        ),
        compiler_params=pltpu.CompilerParams(
            dimension_semantics=("parallel",),
            vmem_limit_bytes=vmem_limit,
        ),
    )(x2d, w2d)

    return out.reshape(orig_shape)


def rmsnorm_ref(x, weight, eps=1e-5):
    """Pure-JAX reference matching the PyTorch forward exactly."""
    input_dtype = x.dtype
    xf = x.astype(jnp.float32)
    var = jnp.mean(xf * xf, axis=-1, keepdims=True)
    hidden = x * lax.rsqrt(var + eps)                    # promotes to float32
    return (weight * hidden).astype(input_dtype)


if __name__ == "__main__":
    key = jax.random.PRNGKey(0)
    k_x, k_w, k_b, k_x2, k_w2, k_x3, k_w3 = jax.random.split(key, 7)

    # Small shapes consistent with the module's forward: (batch, seq, hidden).
    batch, seq, hidden = 2, 8, 128
    x = jax.random.normal(k_x, (batch, seq, hidden), dtype=jnp.float32)
    # Deterministic parameter init (torch.empty is uninitialized; shapes only).
    weight = jax.random.normal(k_w, (hidden,), dtype=jnp.float32)
    bias = jax.random.normal(k_b, (hidden,), dtype=jnp.float32)  # unused in forward (parity only)

    y = jax.block_until_ready(rmsnorm(x, weight, eps=1e-5))
    y_ref = rmsnorm_ref(x, weight, eps=1e-5)
    assert y.shape == x.shape and y.dtype == x.dtype
    assert jnp.allclose(y, y_ref, atol=1e-5, rtol=1e-5), "mismatch vs reference"

    # Non-128 hidden + rows not a multiple of the sublane pack: exercises the
    # full-dim (masked-lane) block and the partial boundary row-block.
    x2 = jax.random.normal(k_x2, (3, 5, 96), dtype=jnp.float32)
    w2 = jax.random.normal(k_w2, (96,), dtype=jnp.float32)
    y2 = jax.block_until_ready(rmsnorm(x2, w2, eps=1e-5))
    assert jnp.allclose(y2, rmsnorm_ref(x2, w2, eps=1e-5), atol=1e-5, rtol=1e-5), \
        "mismatch vs reference (non-128 hidden / partial rows)"

    # Multi-step grid with a partial last block (rows=40, row_tile=16 -> blocks
    # of 16,16,8): exercises boundary masking on a >1-step grid.
    x3 = jax.random.normal(k_x3, (5, 8, 128), dtype=jnp.float32)
    w3 = jax.random.normal(k_w3, (128,), dtype=jnp.float32)
    y3 = jax.block_until_ready(rmsnorm(x3, w3, eps=1e-5, row_tile=16))
    assert jnp.allclose(y3, rmsnorm_ref(x3, w3, eps=1e-5), atol=1e-5, rtol=1e-5), \
        "mismatch vs reference (multi-step partial boundary block)"

    print("KERNEL_OK")
</pallas_src>

<mosaic_0001>
module attributes {stable_mosaic.version = 11 : i64} {
  func.func @_rmsnorm_kernel(%arg0: i32, %arg1: memref<16x128xf32, #tpu.memory_space<vmem>>, %arg2: memref<1x128xf32, #tpu.memory_space<vmem>>, %arg3: memref<16x128xf32, #tpu.memory_space<vmem>>) attributes {dimension_semantics = [#tpu.dimension_semantics<parallel>], iteration_bounds = array<i64: 1>, scalar_prefetch = 0 : i64, scratch_operands = 0 : i64, tpu.core_type = #tpu.core_type<tc>, window_params = [{transform_indices = @transform_0, window_bounds = array<i64: 16, 128>}, {pipeline_mode = #tpu.pipeline_mode<synchronous>, transform_indices = @transform_1, window_bounds = array<i64: 1, 128>}, {transform_indices = @transform_2, window_bounds = array<i64: 16, 128>}]} {
    %c0 = arith.constant 0 : index
    %c0_0 = arith.constant 0 : index
    %0 = vector.load %arg1[%c0, %c0_0] : memref<16x128xf32, #tpu.memory_space<vmem>>, vector<16x128xf32>
    %1 = arith.mulf %0, %0 : vector<16x128xf32>
    %cst = arith.constant dense<0.000000e+00> : vector<16xf32>
    %2 = vector.multi_reduction <add>, %1, %cst [1] : vector<16x128xf32> to vector<16xf32>
    %3 = vector.shape_cast %2 : vector<16xf32> to vector<16x1xf32>
    %cst_1 = arith.constant 1.280000e+02 : f32
    %4 = vector.broadcast %cst_1 : f32 to vector<16x1xf32>
    %5 = arith.divf %3, %4 : vector<16x1xf32>
    %cst_2 = arith.constant 9.99999974E-6 : f32
    %6 = vector.broadcast %cst_2 : f32 to vector<16x1xf32>
    %7 = arith.addf %5, %6 : vector<16x1xf32>
    %8 = math.rsqrt %7 : vector<16x1xf32>
    %c0_3 = arith.constant 0 : index
    %c0_4 = arith.constant 0 : index
    %9 = vector.load %arg2[%c0_3, %c0_4] : memref<1x128xf32, #tpu.memory_space<vmem>>, vector<1x128xf32>
    %10 = vector.broadcast %8 : vector<16x1xf32> to vector<16x128xf32>
    %11 = arith.mulf %0, %10 : vector<16x128xf32>
    %12 = vector.broadcast %9 : vector<1x128xf32> to vector<16x128xf32>
    %13 = arith.mulf %12, %11 : vector<16x128xf32>
    %c0_5 = arith.constant 0 : index
    %c0_6 = arith.constant 0 : index
    %14 = vector.load %arg3[%c0_5, %c0_6] : memref<16x128xf32, #tpu.memory_space<vmem>>, vector<16x128xf32>
    tpu.vector_store %arg3[%c0_5, %c0_6], %13 {strides = array<i32>} : memref<16x128xf32, #tpu.memory_space<vmem>>, vector<16x128xf32>,
    return
  }
  func.func @transform_0(%arg0: i32) -> (i32, i32) {
    %c0_i32 = arith.constant 0 : i32
    %c0_i32_0 = arith.constant 0 : i32
    return %arg0, %c0_i32 : i32, i32
  }
  func.func @transform_1(%arg0: i32) -> (i32, i32) {
    %c0_i32 = arith.constant 0 : i32
    %c0_i32_0 = arith.constant 0 : i32
    %c0_i32_1 = arith.constant 0 : i32
    return %c0_i32, %c0_i32_0 : i32, i32
  }
  func.func @transform_2(%arg0: i32) -> (i32, i32) {
    %c0_i32 = arith.constant 0 : i32
    %c0_i32_0 = arith.constant 0 : i32
    return %arg0, %c0_i32 : i32, i32
  }
}

</mosaic_0001>

<bundles_post_ra>
// kernel: tpu_custom_call.1
= control target key start
LH: loop header
LB: loop body
LE: loop exit
PB: predicated region body
PF: predicated region fallthrough
CT: control target
= control target key end

     0   :  { %7 = vsyncpa [#allocation3], 0  ;;  %s158_s0 = inlined_call_operand.hbm [shape: f32[16,128], index: 0, kind: input, shape index: {}]   ;;  %s159_s1 = inlined_call_operand.vmem [shape: f32[1,128], index: 1, kind: input, shape index: {}]   ;;  %s160_s2 = inlined_call_operand.hbm [shape: f32[16,128], index: 2, kind: output, shape index: {}]  }
   0x1   :  { %8 = vsyncpa [#allocation4], 0  ;;  %s124_s9 = smov [#allocation2]  }
   0x2   :  { %s14_s10 = sshll.u32 %s124_s9, 4  ;;  %s15_s10 = int_to_ptr.vmem [resolvable:$true] %s14_s10 }
   0x3   :  { %s88_s11 = scalar_lea.vmem %s15_s10, 256  ;;  %p93_p1 = scmp.lt.s32.totalorder %s15_s10, %s15_s10 }
   0x4   :  { %p89_p0 = scmp.ne.s32.totalorder %s15_s10, %s88_s11  ;;  %p94_p2 = scmp.lt.s32.totalorder %s88_s11, %s88_s11 }
   0x6   :  { %p95_p3 = por %p94_p2, %p93_p1 }
   0x8   :  { %p96_p4 = pnand %p95_p3, %p89_p0 }
   0xa   :  { %99 = shalt.err (!%p96_p4)
}
   0xb   :  { %s125_s12 = smov 128   ;;  %s126_s13 = smov 8  }
   0xc   :  { %20 = dma.hbm_to_vmem [thread:$0]  %s158_s0, 256, %s15_s10, [#allocation3], %s125_s12, %s125_s12, %s126_s13  }
   0xd   :  { %120 = dma.done.wait [#allocation3], 256  }
   0xe   :  { %121 = vsyncadd [#allocation3], 4294967040  ;;  %v26_v0 = vld [vmem:[#allocation2] sm:$0xff]  ;;  %v27_v1 = vld [vmem:[#allocation2 + $0x8] sm:$0xff]  ;;  %s127_s0 = smov [#allocation5]  }
   0xf   :  { %v28_v2 = vmul.f32 %v26_v0, %v26_v0  ;;  %v29_v3 = vmul.f32 %v27_v1, %v27_v1  ;;  %v71_v11 = vld [vmem:[%s159_s1] ss:$0 sm:$0xff]  ;;  %s59_s18 = sshll.u32 %s127_s0, 4  ;;  %s60_s18 = int_to_ptr.vmem [resolvable:$true] %s59_s18 }
  0x10   :  { %s100_s19 = scalar_lea.vmem %s60_s18, 256  ;;  %p105_p6 = scmp.lt.s32.totalorder %s60_s18, %s60_s18 }
  0x11   :  { %30 = vadd.xlane.f32.xlu0 %v28_v2  ;;  %p101_p5 = scmp.ne.s32.totalorder %s60_s18, %s100_s19  ;;  %p106_p7 = scmp.lt.s32.totalorder %s100_s19, %s100_s19 }
  0x13   :  { %p107_p8 = por %p106_p7, %p105_p6 }
  0x15   :  { %32 = vadd.xlane.f32.xlu0 %v29_v3  ;;  %p108_p9 = pnand %p107_p8, %p101_p5 }
  0x9a   :  { %v31_v4 = vpop.xlane.xlu0 %30 }
  0x9b   :  { %v35_v5 = vmul.f32 0.0078125, %v31_v4 }
  0x9d   :  { %v37_v6 = vadd.f32 1e-05, %v35_v5 }
  0x9e   :  { %v33_v7 = vpop.xlane.xlu0 %32 }
  0x9f   :  { %76 = vrsqrt.f32 %v37_v6  ;;  %v36_v8 = vmul.f32 0.0078125, %v33_v7 }
  0xa1   :  { %v38_v9 = vadd.f32 1e-05, %v36_v8 }
  0xa3   :  { %78 = vrsqrt.f32 %v38_v9 }
  0xac   :  { %v77_v10 = vpop.eup %76 }
  0xad   :  { %v42_v12 = vmul.f32 %v77_v10, %v26_v0 }
  0xaf   :  { %v50_v13 = vmul.f32 %v71_v11, %v42_v12 }
  0xb0   :  { %v79_v14 = vpop.eup %78 }
  0xb1   :  { %v43_v15 = vmul.f32 %v79_v14, %v27_v1  ;;  %52 = vst [vmem:[#allocation5] sm:$0xff] %v50_v13 }
  0xb3   :  { %v51_v16 = vmul.f32 %v71_v11, %v43_v15 }
  0xb5   :  { %53 = vst [vmem:[#allocation5 + $0x8] sm:$0xff] %v51_v16 }
  0xb6   :  { %111 = shalt.err (!%p108_p9)
}
  0xb7   :  { %65 = dma.vmem_to_hbm [thread:$0]  %s60_s18, 256, %s160_s2, [#allocation4], %s125_s12, %s125_s12, %s126_s13  }
  0xb8   :  { %122 = dma.done.wait [#allocation4], 256  }
  0xb9   :  { %123 = vsyncadd [#allocation4], 4294967040 }
  0xba   :  { %69 = vsyncpa [#allocation3], 1 }
  0xbb   :  { %70 = vsyncpa [#allocation4], 1 }

</bundles_post_ra>
